<compile_context>
chip_gen: v5e
topology: v5e:2x2
jax: 0.10.0
libtpu: 0.0.40
codegen_flags: <defaults>
</compile_context>

<pallas_src>
import jax
import jax.numpy as jnp
from jax.experimental import pallas as pl
from jax.experimental.pallas import tpu as pltpu


def _identity_kernel(x_ref, o_ref):
    # The entire hot path of StraightThrough: pass the tile through unchanged.
    o_ref[...] = x_ref[...]


_LANE = 128
# Sublane packing per element size (f32 -> 8, bf16/f16 -> 16, int8/fp8 -> 32).
_SUBLANE_BY_ITEMSIZE = {4: 8, 2: 16, 1: 32}


def _pick_lane_dense_cols(n: int) -> int:
    """Largest lane-dense width (multiple of 128) up to 8192 that divides n."""
    for cols in (8192, 4096, 2048, 1024, 512, 256, 128):
        if n % cols == 0:
            return cols
    return 0


def straight_through(
    x: jax.Array,
    *,
    min_bytes_for_kernel: int = 1 << 20,   # below this, kernel overhead dominates
    target_block_bytes: int = 2 << 20,     # ~2 MiB tiles: v5e-safe, few grid steps
    force_kernel: bool = False,
) -> jax.Array:
    """Identity forward pass of StraightThrough.

    Returns `x` directly for small / awkward shapes (highest-value optimization
    for a no-op); otherwise runs a lane-dense, large-tile, buffer-aliased
    Pallas copy on-TPU.
    """
    if x.size == 0:
        return x

    nbytes = x.size * x.dtype.itemsize
    if not force_kernel and nbytes < min_bytes_for_kernel:
        # Identity op on a small input: skip the kernel, zero HBM traffic.
        return x

    n = x.size
    cols = _pick_lane_dense_cols(n)
    if cols == 0:
        # Total element count is not a multiple of 128 lanes; a lane-dense view
        # would require padding traffic for an op that is a no-op anyway.
        return x

    rows = n // cols
    x2 = x.reshape(rows, cols)

    itemsize = x.dtype.itemsize
    sublane = _SUBLANE_BY_ITEMSIZE.get(itemsize, 8)

    # Rows per tile: aim for ~target_block_bytes per buffer, rounded to the
    # sublane packing, clamped to the array extent.
    tr = max(1, target_block_bytes // (cols * itemsize))
    tr = max(sublane, (tr // sublane) * sublane)
    tr = min(tr, rows)
    # (If rows is not a multiple of tr, Pallas masks the ragged last tile;
    #  correctness is unaffected.)

    grid = (pl.cdiv(rows, tr),)

    out2 = pl.pallas_call(
        _identity_kernel,
        out_shape=jax.ShapeDtypeStruct((rows, cols), x2.dtype),
        grid_spec=pltpu.PrefetchScalarGridSpec(
            num_scalar_prefetch=0,
            grid=grid,
            in_specs=[pl.BlockSpec((tr, cols), lambda i: (i, 0))],
            out_specs=pl.BlockSpec((tr, cols), lambda i: (i, 0)),
        ),
        compiler_params=pltpu.CompilerParams(
            dimension_semantics=("parallel",),
        ),
        # Alias output onto the input buffer: no second HBM allocation/copy.
        input_output_aliases={0: 0},
    )(x2)

    return out2.reshape(x.shape)


# TODO(synk): the PyTorch source pairs this with a straight-through-estimator
# backward elsewhere; only the forward (identity) is implemented here.


if __name__ == "__main__":
    key = jax.random.PRNGKey(0)
    # NCHW, matching typical PyTorch conv-style inputs.
    x = jax.random.normal(key, (2, 4, 16, 16), dtype=jnp.float32)
    # Host copy of the expected values (immune to any buffer aliasing/donation).
    expected = jax.device_get(x)

    # Fast path: small input -> plain identity, no kernel launched.
    y_fast = straight_through(x)
    jax.block_until_ready(y_fast)
    assert y_fast.shape == x.shape and y_fast.dtype == x.dtype
    assert bool((jax.device_get(y_fast) == expected).all())

    # Kernel path forced so the Pallas copy actually executes on-TPU.
    y = straight_through(x, force_kernel=True)
    jax.block_until_ready(y)
    assert y.shape == x.shape and y.dtype == x.dtype
    assert bool((jax.device_get(y) == expected).all())

    print("KERNEL_OK")
</pallas_src>

<mosaic_0001>
module attributes {stable_mosaic.version = 11 : i64} {
  func.func @_identity_kernel(%arg0: i32, %arg1: memref<1x2048xf32, #tpu.memory_space<vmem>>, %arg2: memref<1x2048xf32, #tpu.memory_space<vmem>>) attributes {dimension_semantics = [#tpu.dimension_semantics<parallel>], iteration_bounds = array<i64: 1>, scalar_prefetch = 0 : i64, scratch_operands = 0 : i64, tpu.core_type = #tpu.core_type<tc>, window_params = [{transform_indices = @transform_0, window_bounds = array<i64: 1, 2048>}, {transform_indices = @transform_1, window_bounds = array<i64: 1, 2048>}]} {
    %c0 = arith.constant 0 : index
    %c0_0 = arith.constant 0 : index
    %0 = vector.load %arg1[%c0, %c0_0] : memref<1x2048xf32, #tpu.memory_space<vmem>>, vector<1x2048xf32>
    %c0_1 = arith.constant 0 : index
    %c0_2 = arith.constant 0 : index
    %1 = vector.load %arg2[%c0_1, %c0_2] : memref<1x2048xf32, #tpu.memory_space<vmem>>, vector<1x2048xf32>
    tpu.vector_store %arg2[%c0_1, %c0_2], %0 {strides = array<i32>} : memref<1x2048xf32, #tpu.memory_space<vmem>>, vector<1x2048xf32>,
    return
  }
  func.func @transform_0(%arg0: i32) -> (i32, i32) {
    %c0_i32 = arith.constant 0 : i32
    %c0_i32_0 = arith.constant 0 : i32
    return %arg0, %c0_i32 : i32, i32
  }
  func.func @transform_1(%arg0: i32) -> (i32, i32) {
    %c0_i32 = arith.constant 0 : i32
    %c0_i32_0 = arith.constant 0 : i32
    return %arg0, %c0_i32 : i32, i32
  }
}

</mosaic_0001>

<bundles_post_ra>
// kernel: tpu_custom_call.1
= control target key start
LH: loop header
LB: loop body
LE: loop exit
PB: predicated region body
PF: predicated region fallthrough
CT: control target
= control target key end

     0   :  { %6 = vsyncpa [#allocation3], 0  ;;  %s116_s0 = inlined_call_operand.hbm [shape: f32[1,2048], index: 0, kind: input, shape index: {}, may-alias: {0,1}]   ;;  %s117_s1 = inlined_call_operand.hbm [shape: f32[1,2048], index: 1, kind: output, shape index: {}, may-alias: {0,1}]  }
   0x1   :  { %7 = vsyncpa [#allocation4], 0  ;;  %s13_s8 = sshll.u32 %s116_s0, 4  ;;  %s98_s9 = smov [#allocation2]   ;;  %s14_s8 = int_to_ptr.hbm [resolvable:$true] %s13_s8 }
   0x2   :  { %s15_s10 = sshll.u32 %s98_s9, 4  ;;  %s16_s10 = int_to_ptr.vmem [resolvable:$true] %s15_s10 }
   0x3   :  { %18 = dma.hbm_to_vmem [thread:$0]  %s14_s8, 256, %s16_s10, [#allocation3]  }
   0x4   :  { %94 = dma.done.wait [#allocation3], 256  }
   0x5   :  { %95 = vsyncadd [#allocation3], 4294967040  ;;  %s99_s11 = smov [#allocation5]   ;;  %s34_s15 = sshll.u32 %s117_s1, 4  ;;  %v23_v0 = vld [vmem:[#allocation2] sm:$0xff]  ;;  %v24_v1 = vld [vmem:[#allocation2 + $0x8] sm:$0xff]  ;;  %s35_s15 = int_to_ptr.hbm [resolvable:$true] %s34_s15 }
   0x6   :  { %s32_s12 = sshll.u32 %s99_s11, 4  ;;  %25 = vst [vmem:[#allocation5] sm:$0xff] %v23_v0  ;;  %s33_s12 = int_to_ptr.vmem [resolvable:$true] %s32_s12 }
   0x7   :  { %26 = vst [vmem:[#allocation5 + $0x8] sm:$0xff] %v24_v1 }
   0x8   :  { %37 = dma.vmem_to_hbm [thread:$0]  %s33_s12, 256, %s35_s15, [#allocation4]  }
   0x9   :  { %96 = dma.done.wait [#allocation4], 256  }
   0xa   :  { %97 = vsyncadd [#allocation4], 4294967040 }
   0xb   :  { %42 = vsyncpa [#allocation3], 1 }
   0xc   :  { %43 = vsyncpa [#allocation4], 1 }

</bundles_post_ra>
